<compile_context>
chip_gen: v5e
topology: v5e:2x2
jax: 0.10.0
libtpu: 0.0.40
codegen_flags: <defaults>
</compile_context>

<pallas_src>
import jax
import jax.numpy as jnp
from jax.experimental import pallas as pl
from jax.experimental.pallas import tpu as pltpu

# Constants baked from Stroop_Model.__init__ (torch nn.Linear convention: y = x @ W.T).
_ICC = 2.5    # input_color_hidden_color = [[1,-1],[-1,1]] * 2.5
_IWW = 2.6    # input_word_hidden_word   = [[1,-1],[-1,1]] * 2.6
_HCO = 2.5    # hidden_color_output == hidden_word_output = [[1,-1],[-1,1]] * 2.5
_THC = 4.0    # task_hidden_color = [[1,0],[1,0]] * 4 -> both hidden units get 4*task0
# task_hidden_word = [[0,1],[0,1]] * 0 is identically zero and is folded away.
_BIAS = -4.0

_LANES = 128
_SUBLANES = 8


def _sigmoid_1push(z):
    # sigmoid(z) == 0.5 * tanh(0.5 * z) + 0.5  -> a single EUP transcendental per value.
    return 0.5 * jnp.tanh(0.5 * z) + 0.5


def _stroop_kernel(x_ref, out_ref):
    # x_ref: (6, TILE_R, 128) feature-major block; out_ref: (2, TILE_R, 128).
    # Every operand below is a dense (TILE_R, 128) f32 slab.
    c0 = x_ref[0]          # color unit 0
    c1 = x_ref[1]          # color unit 1
    w0 = x_ref[2]          # word unit 0
    w1 = x_ref[3]          # word unit 1
    t0 = x_ref[4]          # task unit 0
    # x_ref[5] (task unit 1) only feeds the all-zero task->word weights; folded away.

    d_c = c0 - c1
    d_w = w0 - w1
    t_term = _THC * t0 + _BIAS

    ch0 = _sigmoid_1push(_ICC * d_c + t_term)
    ch1 = _sigmoid_1push(t_term - _ICC * d_c)
    wh0 = _sigmoid_1push(_IWW * d_w + _BIAS)
    wh1 = _sigmoid_1push(_BIAS - _IWW * d_w)

    # Output 2x2 layers are antisymmetric with equal scale -> o1 == -o0 exactly.
    o0 = _HCO * ((ch0 - ch1) + (wh0 - wh1))
    out_ref[0] = o0
    out_ref[1] = -o0


def stroop_forward_slabs(x_slabs, *, tile_rows=None):
    """Kernel entry on feature-major slabs.

    x_slabs: (6, rows, 128) float32 with rows % 8 == 0 and rows % tile_rows == 0.
    Returns (2, rows, 128) float32.
    """
    nfeat, rows, lanes = x_slabs.shape
    assert nfeat == 6 and lanes == _LANES and rows % _SUBLANES == 0
    if tile_rows is None:
        tile_rows = min(rows, 2048)
    assert rows % tile_rows == 0

    in_tile_bytes = 6 * tile_rows * _LANES * 4
    out_tile_bytes = 2 * tile_rows * _LANES * 4
    vmem_bytes = 2 * (in_tile_bytes + out_tile_bytes) + (4 << 20)  # double-buffered + margin

    return pl.pallas_call(
        _stroop_kernel,
        out_shape=jax.ShapeDtypeStruct((2, rows, _LANES), jnp.float32),
        grid=(rows // tile_rows,),
        in_specs=[pl.BlockSpec((6, tile_rows, _LANES), lambda i: (0, i, 0))],
        out_specs=pl.BlockSpec((2, tile_rows, _LANES), lambda i: (0, i, 0)),
        compiler_params=pltpu.CompilerParams(
            dimension_semantics=("parallel",),   # megacore / 2-TC sharding on v7x
            vmem_limit_bytes=int(vmem_bytes)),
    )(x_slabs)


def stroop_forward(x, *, target_rows=2048):
    """Forward pass of Stroop_Model.  x: (B, 6) or (6,) float array -> (B, 2)."""
    x = jnp.asarray(x, dtype=jnp.float32)
    if x.ndim <= 1:                              # torch: input.view(1, len(input))
        x = x.reshape(1, x.shape[0])
    B = x.shape[0]
    if B == 0:
        return jnp.zeros((0, 2), dtype=jnp.float32)

    target_rows = max(_SUBLANES, (target_rows // _SUBLANES) * _SUBLANES)

    # rows rounded up to a multiple of 8 (sublane-aligned); tile chosen so that
    # padding is at most ~8 rows per grid step (<0.4% extra HBM traffic).
    rows0 = pl.cdiv(B, _SUBLANES * _LANES) * _SUBLANES
    num_steps = pl.cdiv(rows0, target_rows)
    tile_rows = pl.cdiv(pl.cdiv(rows0, num_steps), _SUBLANES) * _SUBLANES
    rows = tile_rows * num_steps
    b_pad = rows * _LANES

    # Feature-major, sublane-dense layout: (6, rows, 128).
    # TODO(synk): for a fully roofline-bound pipeline, keep activations in this
    # (6, rows, 128) layout upstream and call stroop_forward_slabs directly so the
    # transpose/pad/unpad HBM passes below disappear.
    xt = jnp.pad(x.T, ((0, 0), (0, b_pad - B))).reshape(6, rows, _LANES)

    out_slabs = stroop_forward_slabs(xt, tile_rows=tile_rows)
    return out_slabs.reshape(2, b_pad)[:, :B].T   # back to torch-style (B, 2)


def stroop_reference(x):
    # Pure-JAX reference mirroring the torch forward exactly.
    x = jnp.asarray(x, dtype=jnp.float32)
    if x.ndim <= 1:
        x = x.reshape(1, x.shape[0])
    base = jnp.array([[1.0, -1.0], [-1.0, 1.0]], dtype=jnp.float32)
    w_icc = base * 2.5
    w_iww = base * 2.6
    w_hco = base * 2.5
    w_hwo = base * 2.5
    w_thc = jnp.array([[1.0, 0.0], [1.0, 0.0]], dtype=jnp.float32) * 4.0
    w_thw = jnp.array([[0.0, 1.0], [0.0, 1.0]], dtype=jnp.float32) * 0.0
    bias = -4.0
    color, word, task = x[:, 0:2], x[:, 2:4], x[:, 4:6]
    color_hidden = jax.nn.sigmoid(color @ w_icc.T + task @ w_thc.T + bias)
    word_hidden = jax.nn.sigmoid(word @ w_iww.T + task @ w_thw.T + bias)
    return color_hidden @ w_hco.T + word_hidden @ w_hwo.T


if __name__ == "__main__":
    key = jax.random.PRNGKey(0)
    B = 4
    # (B, 6): [color(2), word(2), task(2)], values in [0, 1] like stimulus activations.
    x = jax.random.uniform(key, (B, 6), dtype=jnp.float32)

    out = jax.block_until_ready(stroop_forward(x))
    ref = stroop_reference(x)
    assert out.shape == (B, 2), out.shape
    assert jnp.allclose(out, ref, atol=1e-5, rtol=1e-5), (out, ref)

    # 1-D input path (torch's input.view(1, len(input))).
    x1 = jax.random.uniform(jax.random.PRNGKey(1), (6,), dtype=jnp.float32)
    out1 = jax.block_until_ready(stroop_forward(x1))
    assert out1.shape == (1, 2), out1.shape
    assert jnp.allclose(out1, stroop_reference(x1), atol=1e-5, rtol=1e-5), (out1,)

    # Non-multiple-of-128 batch to exercise the pad/unpad path.
    x2 = jax.random.uniform(jax.random.PRNGKey(2), (300, 6), dtype=jnp.float32)
    out2 = jax.block_until_ready(stroop_forward(x2))
    assert out2.shape == (300, 2), out2.shape
    assert jnp.allclose(out2, stroop_reference(x2), atol=1e-5, rtol=1e-5)

    print("KERNEL_OK")
</pallas_src>

<mosaic_0001>
module attributes {stable_mosaic.version = 11 : i64} {
  func.func @_stroop_kernel(%arg0: i32, %arg1: memref<6x8x128xf32, #tpu.memory_space<vmem>>, %arg2: memref<2x8x128xf32, #tpu.memory_space<vmem>>) attributes {dimension_semantics = [#tpu.dimension_semantics<parallel>], iteration_bounds = array<i64: 1>, scalar_prefetch = 0 : i64, scratch_operands = 0 : i64, tpu.core_type = #tpu.core_type<tc>, window_params = [{transform_indices = @transform_0, window_bounds = array<i64: 6, 8, 128>}, {transform_indices = @transform_1, window_bounds = array<i64: 2, 8, 128>}]} {
    %c0 = arith.constant 0 : index
    %c0_0 = arith.constant 0 : index
    %c0_1 = arith.constant 0 : index
    %0 = vector.load %arg1[%c0, %c0_0, %c0_1] : memref<6x8x128xf32, #tpu.memory_space<vmem>>, vector<1x8x128xf32>
    %1 = vector.shape_cast %0 : vector<1x8x128xf32> to vector<8x128xf32>
    %c1 = arith.constant 1 : index
    %c0_2 = arith.constant 0 : index
    %c0_3 = arith.constant 0 : index
    %2 = vector.load %arg1[%c1, %c0_2, %c0_3] : memref<6x8x128xf32, #tpu.memory_space<vmem>>, vector<1x8x128xf32>
    %3 = vector.shape_cast %2 : vector<1x8x128xf32> to vector<8x128xf32>
    %c2 = arith.constant 2 : index
    %c0_4 = arith.constant 0 : index
    %c0_5 = arith.constant 0 : index
    %4 = vector.load %arg1[%c2, %c0_4, %c0_5] : memref<6x8x128xf32, #tpu.memory_space<vmem>>, vector<1x8x128xf32>
    %5 = vector.shape_cast %4 : vector<1x8x128xf32> to vector<8x128xf32>
    %c3 = arith.constant 3 : index
    %c0_6 = arith.constant 0 : index
    %c0_7 = arith.constant 0 : index
    %6 = vector.load %arg1[%c3, %c0_6, %c0_7] : memref<6x8x128xf32, #tpu.memory_space<vmem>>, vector<1x8x128xf32>
    %7 = vector.shape_cast %6 : vector<1x8x128xf32> to vector<8x128xf32>
    %c4 = arith.constant 4 : index
    %c0_8 = arith.constant 0 : index
    %c0_9 = arith.constant 0 : index
    %8 = vector.load %arg1[%c4, %c0_8, %c0_9] : memref<6x8x128xf32, #tpu.memory_space<vmem>>, vector<1x8x128xf32>
    %9 = vector.shape_cast %8 : vector<1x8x128xf32> to vector<8x128xf32>
    %10 = arith.subf %1, %3 : vector<8x128xf32>
    %11 = arith.subf %5, %7 : vector<8x128xf32>
    %cst = arith.constant 4.000000e+00 : f32
    %12 = vector.broadcast %cst : f32 to vector<8x128xf32>
    %13 = arith.mulf %12, %9 : vector<8x128xf32>
    %cst_10 = arith.constant -4.000000e+00 : f32
    %14 = vector.broadcast %cst_10 : f32 to vector<8x128xf32>
    %15 = arith.addf %13, %14 : vector<8x128xf32>
    %cst_11 = arith.constant 2.500000e+00 : f32
    %16 = vector.broadcast %cst_11 : f32 to vector<8x128xf32>
    %17 = arith.mulf %16, %10 : vector<8x128xf32>
    %18 = arith.addf %17, %15 : vector<8x128xf32>
    %cst_12 = arith.constant 5.000000e-01 : f32
    %19 = vector.broadcast %cst_12 : f32 to vector<8x128xf32>
    %20 = arith.mulf %19, %18 : vector<8x128xf32>
    %21 = math.tanh %20 : vector<8x128xf32>
    %cst_13 = arith.constant 5.000000e-01 : f32
    %22 = vector.broadcast %cst_13 : f32 to vector<8x128xf32>
    %23 = arith.mulf %22, %21 : vector<8x128xf32>
    %cst_14 = arith.constant 5.000000e-01 : f32
    %24 = vector.broadcast %cst_14 : f32 to vector<8x128xf32>
    %25 = arith.addf %23, %24 : vector<8x128xf32>
    %cst_15 = arith.constant 2.500000e+00 : f32
    %26 = vector.broadcast %cst_15 : f32 to vector<8x128xf32>
    %27 = arith.mulf %26, %10 : vector<8x128xf32>
    %28 = arith.subf %15, %27 : vector<8x128xf32>
    %cst_16 = arith.constant 5.000000e-01 : f32
    %29 = vector.broadcast %cst_16 : f32 to vector<8x128xf32>
    %30 = arith.mulf %29, %28 : vector<8x128xf32>
    %31 = math.tanh %30 : vector<8x128xf32>
    %cst_17 = arith.constant 5.000000e-01 : f32
    %32 = vector.broadcast %cst_17 : f32 to vector<8x128xf32>
    %33 = arith.mulf %32, %31 : vector<8x128xf32>
    %cst_18 = arith.constant 5.000000e-01 : f32
    %34 = vector.broadcast %cst_18 : f32 to vector<8x128xf32>
    %35 = arith.addf %33, %34 : vector<8x128xf32>
    %cst_19 = arith.constant 2.600000e+00 : f32
    %36 = vector.broadcast %cst_19 : f32 to vector<8x128xf32>
    %37 = arith.mulf %36, %11 : vector<8x128xf32>
    %cst_20 = arith.constant -4.000000e+00 : f32
    %38 = vector.broadcast %cst_20 : f32 to vector<8x128xf32>
    %39 = arith.addf %37, %38 : vector<8x128xf32>
    %cst_21 = arith.constant 5.000000e-01 : f32
    %40 = vector.broadcast %cst_21 : f32 to vector<8x128xf32>
    %41 = arith.mulf %40, %39 : vector<8x128xf32>
    %42 = math.tanh %41 : vector<8x128xf32>
    %cst_22 = arith.constant 5.000000e-01 : f32
    %43 = vector.broadcast %cst_22 : f32 to vector<8x128xf32>
    %44 = arith.mulf %43, %42 : vector<8x128xf32>
    %cst_23 = arith.constant 5.000000e-01 : f32
    %45 = vector.broadcast %cst_23 : f32 to vector<8x128xf32>
    %46 = arith.addf %44, %45 : vector<8x128xf32>
    %cst_24 = arith.constant 2.600000e+00 : f32
    %47 = vector.broadcast %cst_24 : f32 to vector<8x128xf32>
    %48 = arith.mulf %47, %11 : vector<8x128xf32>
    %cst_25 = arith.constant -4.000000e+00 : f32
    %49 = vector.broadcast %cst_25 : f32 to vector<8x128xf32>
    %50 = arith.subf %49, %48 : vector<8x128xf32>
    %cst_26 = arith.constant 5.000000e-01 : f32
    %51 = vector.broadcast %cst_26 : f32 to vector<8x128xf32>
    %52 = arith.mulf %51, %50 : vector<8x128xf32>
    %53 = math.tanh %52 : vector<8x128xf32>
    %cst_27 = arith.constant 5.000000e-01 : f32
    %54 = vector.broadcast %cst_27 : f32 to vector<8x128xf32>
    %55 = arith.mulf %54, %53 : vector<8x128xf32>
    %cst_28 = arith.constant 5.000000e-01 : f32
    %56 = vector.broadcast %cst_28 : f32 to vector<8x128xf32>
    %57 = arith.addf %55, %56 : vector<8x128xf32>
    %58 = arith.subf %25, %35 : vector<8x128xf32>
    %59 = arith.subf %46, %57 : vector<8x128xf32>
    %60 = arith.addf %58, %59 : vector<8x128xf32>
    %cst_29 = arith.constant 2.500000e+00 : f32
    %61 = vector.broadcast %cst_29 : f32 to vector<8x128xf32>
    %62 = arith.mulf %61, %60 : vector<8x128xf32>
    %c0_30 = arith.constant 0 : index
    %c0_31 = arith.constant 0 : index
    %c0_32 = arith.constant 0 : index
    %63 = vector.load %arg2[%c0_30, %c0_31, %c0_32] : memref<2x8x128xf32, #tpu.memory_space<vmem>>, vector<1x8x128xf32>
    %64 = vector.shape_cast %63 : vector<1x8x128xf32> to vector<8x128xf32>
    %65 = vector.shape_cast %62 : vector<8x128xf32> to vector<1x8x128xf32>
    tpu.vector_store %arg2[%c0_30, %c0_31, %c0_32], %65 {strides = array<i32>} : memref<2x8x128xf32, #tpu.memory_space<vmem>>, vector<1x8x128xf32>,
    %cst_33 = arith.constant 0.000000e+00 : f32
    %66 = vector.broadcast %cst_33 : f32 to vector<8x128xf32>
    %67 = arith.subf %66, %62 : vector<8x128xf32>
    %c1_34 = arith.constant 1 : index
    %c0_35 = arith.constant 0 : index
    %c0_36 = arith.constant 0 : index
    %68 = vector.load %arg2[%c1_34, %c0_35, %c0_36] : memref<2x8x128xf32, #tpu.memory_space<vmem>>, vector<1x8x128xf32>
    %69 = vector.shape_cast %68 : vector<1x8x128xf32> to vector<8x128xf32>
    %70 = vector.shape_cast %67 : vector<8x128xf32> to vector<1x8x128xf32>
    tpu.vector_store %arg2[%c1_34, %c0_35, %c0_36], %70 {strides = array<i32>} : memref<2x8x128xf32, #tpu.memory_space<vmem>>, vector<1x8x128xf32>,
    return
  }
  func.func @transform_0(%arg0: i32) -> (i32, i32, i32) {
    %c0_i32 = arith.constant 0 : i32
    %c0_i32_0 = arith.constant 0 : i32
    %c0_i32_1 = arith.constant 0 : i32
    return %c0_i32, %arg0, %c0_i32_0 : i32, i32, i32
  }
  func.func @transform_1(%arg0: i32) -> (i32, i32, i32) {
    %c0_i32 = arith.constant 0 : i32
    %c0_i32_0 = arith.constant 0 : i32
    %c0_i32_1 = arith.constant 0 : i32
    return %c0_i32, %arg0, %c0_i32_0 : i32, i32, i32
  }
}

</mosaic_0001>

<bundles_post_ra>
// kernel: tpu_custom_call.1
= control target key start
LH: loop header
LB: loop body
LE: loop exit
PB: predicated region body
PF: predicated region fallthrough
CT: control target
= control target key end

     0   :  { %6 = vsyncpa [#allocation3], 0  ;;  %s177_s0 = inlined_call_operand.hbm [shape: f32[6,8,128], index: 0, kind: input, shape index: {}]   ;;  %s178_s1 = inlined_call_operand.hbm [shape: f32[2,8,128], index: 1, kind: output, shape index: {}]  }
   0x1   :  { %7 = vsyncpa [#allocation4], 0  ;;  %s12_s8 = sshll.u32 %s177_s0, 4  ;;  %s151_s9 = smov [#allocation2]   ;;  %s13_s8 = int_to_ptr.hbm [resolvable:$true] %s12_s8 }
   0x2   :  { %s14_s10 = sshll.u32 %s151_s9, 4  ;;  %s152_s11 = smov 128   ;;  %s15_s10 = int_to_ptr.vmem [resolvable:$true] %s14_s10 }
   0x3   :  { %s153_s12 = smov 8  }
   0x4   :  { %20 = dma.hbm_to_vmem [thread:$0]  %s13_s8, 768, %s15_s10, [#allocation3], %s152_s11, %s152_s11, %s153_s12  }
   0x5   :  { %147 = dma.done.wait [#allocation3], 768  }
   0x6   :  { %148 = vsyncadd [#allocation3], 4294966528  ;;  %v25_v0 = vld [vmem:[#allocation2] sm:$0xff]  ;;  %v27_v1 = vld [vmem:[#allocation2 + $0x8] sm:$0xff]  ;;  %s154_s0 = smov [#allocation5]   ;;  %s74_s16 = sshll.u32 %s178_s1, 4  ;;  %s75_s16 = int_to_ptr.hbm [resolvable:$true] %s74_s16 }
   0x7   :  { %v29_v2 = vld [vmem:[#allocation2 + $0x10] sm:$0xff]  ;;  %v31_v3 = vld [vmem:[#allocation2 + $0x18] sm:$0xff]  ;;  %v33_v4 = vld [vmem:[#allocation2 + $0x20] sm:$0xff]  ;;  %v34_v5 = vsub.f32 %v25_v0, %v27_v1  ;;  %s72_s13 = sshll.u32 %s154_s0, 4  ;;  %s73_s13 = int_to_ptr.vmem [resolvable:$true] %s72_s13 }
   0x8   :  { %v35_v6 = vsub.f32 %v29_v2, %v31_v3  ;;  %v36_v7 = vmul.f32 4.0, %v33_v4 }
   0x9   :  { %v38_v8 = vmul.f32 2.5, %v34_v5 }
   0xa   :  { %v37_v9 = vadd.f32 -4.0, %v36_v7  ;;  %v49_v10 = vmul.f32 2.6, %v35_v6 }
   0xc   :  { %v39_v11 = vadd.f32 %v38_v8, %v37_v9  ;;  %v44_v12 = vsub.f32 %v37_v9, %v38_v8  ;;  %v50_v13 = vadd.f32 -4.0, %v49_v10  ;;  %v55_v14 = vsub.f32 -4.0, %v49_v10 }
   0xe   :  { %v40_v15 = vmul.f32 0.5, %v39_v11  ;;  %v45_v16 = vmul.f32 0.5, %v44_v12  ;;  %v51_v17 = vmul.f32 0.5, %v50_v13  ;;  %v56_v18 = vmul.f32 0.5, %v55_v14 }
  0x10   :  { %91 = vtanh.f32 %v40_v15 }
  0x11   :  { %93 = vtanh.f32 %v45_v16 }
  0x12   :  { %95 = vtanh.f32 %v51_v17 }
  0x13   :  { %97 = vtanh.f32 %v56_v18 }
  0x16   :  { %v92_v19 = vpop.eup %91 }
  0x17   :  { %v94_v20 = vpop.eup %93  ;;  %v42_v21 = vmul.f32 0.5, %v92_v19 }
  0x18   :  { %v96_v22 = vpop.eup %95  ;;  %v47_v23 = vmul.f32 0.5, %v94_v20 }
  0x19   :  { %v98_v24 = vpop.eup %97  ;;  %v43_v25 = vadd.f32 0.5, %v42_v21  ;;  %v53_v26 = vmul.f32 0.5, %v96_v22 }
  0x1a   :  { %v48_v27 = vadd.f32 0.5, %v47_v23  ;;  %v58_v28 = vmul.f32 0.5, %v98_v24 }
  0x1b   :  { %v54_v29 = vadd.f32 0.5, %v53_v26 }
  0x1c   :  { %v59_v30 = vadd.f32 0.5, %v58_v28  ;;  %v60_v31 = vsub.f32 %v43_v25, %v48_v27 }
  0x1e   :  { %v61_v32 = vsub.f32 %v54_v29, %v59_v30 }
  0x20   :  { %v62_v33 = vadd.f32 %v61_v32, %v60_v31 }
  0x22   :  { %v63_v34 = vmul.f32 2.5, %v62_v33 }
  0x24   :  { %64 = vst [vmem:[#allocation5] sm:$0xff] %v63_v34  ;;  %v65_v35 = vsub.f32 0.0, %v63_v34 }
  0x26   :  { %67 = vst [vmem:[#allocation5 + $0x8] sm:$0xff] %v65_v35 }
  0x27   :  { %80 = dma.vmem_to_hbm [thread:$0]  %s73_s13, 256, %s75_s16, [#allocation4], %s152_s11, %s152_s11, %s153_s12  }
  0x28   :  { %149 = dma.done.wait [#allocation4], 256  }
  0x29   :  { %150 = vsyncadd [#allocation4], 4294967040 }
  0x2a   :  { %85 = vsyncpa [#allocation3], 1 }
  0x2b   :  { %86 = vsyncpa [#allocation4], 1 }

</bundles_post_ra>
